<compile_context>
chip_gen: v7x
topology: tpu7x:2x2x1
jax: 0.10.0
libtpu: 0.0.40
codegen_flags: <defaults>
</compile_context>

<pallas_src>
import jax
import jax.numpy as jnp
from jax.experimental import pallas as pl
from jax.experimental.pallas import tpu as pltpu

LANE = 128


def _round_up(n, m):
    return ((n + m - 1) // m) * m


def fnn_kernel(x_ref, w1_ref, w2_ref, w3_ref, o_ref):
    # x arrives bf16 from HBM; the cast is a no-op (kept so the kernel also
    # accepts f32/int inputs per the module's x.float() semantics).
    x = x_ref[...].astype(jnp.bfloat16)
    h1 = jnp.dot(x, w1_ref[...], preferred_element_type=jnp.float32)
    h1 = jnp.maximum(h1, 0.0)
    h2 = jnp.dot(h1.astype(jnp.bfloat16), w2_ref[...],
                 preferred_element_type=jnp.float32)
    h2 = jnp.maximum(h2, 0.0)
    o = jnp.dot(h2.astype(jnp.bfloat16), w3_ref[...],
                preferred_element_type=jnp.float32)
    # bf16 store of the lane-padded output block (halves writeback traffic).
    o_ref[...] = o.astype(o_ref.dtype)


def prepare_params(w1_t, w2_t, w3_t):
    """Pad (in, out)-layout weights to lane-aligned out dims and cast to bf16.

    Done once at parameter-setup time (not per forward call).
    """
    def pad_cast(w, rows_p, cols_p):
        buf = jnp.zeros((rows_p, cols_p), jnp.bfloat16)
        return buf.at[: w.shape[0], : w.shape[1]].set(w.astype(jnp.bfloat16))

    in_size, h1 = w1_t.shape
    h2 = w2_t.shape[1]
    out = w3_t.shape[1]
    h1p, h2p, outp = _round_up(h1, LANE), _round_up(h2, LANE), _round_up(out, LANE)
    return (pad_cast(w1_t, in_size, h1p),
            pad_cast(w2_t, h1p, h2p),
            pad_cast(w3_t, h2p, outp))


def _choose_batch_tile(B, block_b):
    """8-aligned batch tile; >= 2 tiles when possible so v7x megacore splits."""
    block_b = max(8, (block_b // 8) * 8)
    if B < 16:
        return B                      # single tiny tile (block == full dim)
    # Force at least 2 grid steps so the "parallel" axis can use both
    # TensorCores on v7x; neutral on single-TC v5e/v6e.
    half = _round_up(pl.cdiv(B, 2), 8)
    return min(block_b, half)


def fnn_forward(x, w1p, w2p, w3p, out_size, *, block_b=1024):
    """x: (B, C, H, W) or (B, input_size), ideally bf16; w*p: padded bf16 (in, out)."""
    B = x.shape[0]
    x2d = x.reshape(B, -1)                      # nn.Flatten()
    in_size = x2d.shape[1]
    h1p, h2p, outp = w1p.shape[1], w2p.shape[1], w3p.shape[1]

    tb = _choose_batch_tile(B, block_b)
    grid = (pl.cdiv(B, tb),)

    cost = pl.CostEstimate(
        flops=2 * B * (in_size * h1p + h1p * h2p + h2p * outp),
        transcendentals=0,
        bytes_accessed=(x2d.size * x2d.dtype.itemsize                 # x stream
                        + 2 * (w1p.size + w2p.size + w3p.size)        # bf16 weights
                        + B * outp * 2),                              # bf16 output
    )

    out_padded = pl.pallas_call(
        fnn_kernel,
        out_shape=jax.ShapeDtypeStruct((B, outp), jnp.bfloat16),
        grid=grid,
        in_specs=[
            pl.BlockSpec((tb, in_size), lambda i: (i, 0)),
            # Constant index maps -> weights loaded once, resident across tiles.
            pl.BlockSpec(w1p.shape, lambda i: (0, 0)),
            pl.BlockSpec(w2p.shape, lambda i: (0, 0)),
            pl.BlockSpec(w3p.shape, lambda i: (0, 0)),
        ],
        out_specs=pl.BlockSpec((tb, outp), lambda i: (i, 0)),
        compiler_params=pltpu.CompilerParams(
            dimension_semantics=("parallel",),   # megacore batch split on v7x
        ),
        cost_estimate=cost,
    )(x2d, w1p, w2p, w3p)

    # Slice the zero-padded columns back to the true output size and restore
    # the module's f32 output dtype.  This touches only (B, out_size) elements
    # (the padded bf16 slab store above is what carries the HBM cost).
    return out_padded[:, :out_size].astype(jnp.float32)


def init_params(key, input_size, output_size):
    # Deterministic Kaiming-uniform-like init (PyTorch Linear default):
    # U(-1/sqrt(fan_in), 1/sqrt(fan_in)). bias=False, so no biases.
    k1, k2, k3 = jax.random.split(key, 3)

    def lin(k, fan_in, fan_out):
        bound = 1.0 / jnp.sqrt(fan_in)
        # PyTorch stores (out, in); we return the transposed (in, out) copy.
        w = jax.random.uniform(k, (fan_out, fan_in), jnp.float32, -bound, bound)
        return w.T

    w1_t = lin(k1, input_size, 100)
    w2_t = lin(k2, 100, 30)
    w3_t = lin(k3, 30, output_size)
    return w1_t, w2_t, w3_t


if __name__ == "__main__":
    key = jax.random.PRNGKey(0)
    kx, kp = jax.random.split(key)

    B, C, H, W = 8, 1, 28, 28          # MNIST-like small batch
    input_size = C * H * W             # 784
    output_size = 10

    # x kept bf16 end-to-end in the data path (halves the dominant HBM stream).
    x = jax.random.normal(kx, (B, C, H, W), jnp.bfloat16)
    w1_t, w2_t, w3_t = init_params(kp, input_size, output_size)
    w1p, w2p, w3p = prepare_params(w1_t, w2_t, w3_t)

    out = fnn_forward(x, w1p, w2p, w3p, output_size)
    out = jax.block_until_ready(out)

    # Pure-JAX reference with the same bf16 casts and f32 accumulation as the
    # kernel (zero padding is exact, so the unpadded reference matches).
    x2d = x.astype(jnp.bfloat16).reshape(B, -1)
    w1b = w1_t.astype(jnp.bfloat16)
    w2b = w2_t.astype(jnp.bfloat16)
    w3b = w3_t.astype(jnp.bfloat16)
    h1 = jnp.maximum(
        jnp.dot(x2d, w1b, preferred_element_type=jnp.float32), 0.0)
    h2 = jnp.maximum(
        jnp.dot(h1.astype(jnp.bfloat16), w2b, preferred_element_type=jnp.float32), 0.0)
    ref = jnp.dot(h2.astype(jnp.bfloat16), w3b, preferred_element_type=jnp.float32)
    ref = ref.astype(jnp.bfloat16).astype(jnp.float32)   # match bf16 output store

    assert out.shape == (B, output_size)
    assert jnp.allclose(out, ref, atol=2e-2, rtol=2e-2), float(
        jnp.max(jnp.abs(out - ref)))

    print("KERNEL_OK")
</pallas_src>

<mosaic_0001>
module attributes {stable_mosaic.version = 11 : i64} {
  func.func @fnn_kernel(%arg0: i32, %arg1: memref<8x784xbf16, #tpu.memory_space<vmem>>, %arg2: memref<784x128xbf16, #tpu.memory_space<vmem>>, %arg3: memref<128x128xbf16, #tpu.memory_space<vmem>>, %arg4: memref<128x128xbf16, #tpu.memory_space<vmem>>, %arg5: memref<8x128xbf16, #tpu.memory_space<vmem>>) attributes {dimension_semantics = [#tpu.dimension_semantics<parallel>], iteration_bounds = array<i64: 1>, scalar_prefetch = 0 : i64, scratch_operands = 0 : i64, tpu.core_type = #tpu.core_type<tc>, window_params = [{transform_indices = @transform_0, window_bounds = array<i64: 8, 784>}, {pipeline_mode = #tpu.pipeline_mode<synchronous>, transform_indices = @transform_1, window_bounds = array<i64: 784, 128>}, {pipeline_mode = #tpu.pipeline_mode<synchronous>, transform_indices = @transform_2, window_bounds = array<i64: 128, 128>}, {pipeline_mode = #tpu.pipeline_mode<synchronous>, transform_indices = @transform_3, window_bounds = array<i64: 128, 128>}, {transform_indices = @transform_4, window_bounds = array<i64: 8, 128>}]} {
    %c0 = arith.constant 0 : index
    %c0_0 = arith.constant 0 : index
    %0 = vector.load %arg1[%c0, %c0_0] : memref<8x784xbf16, #tpu.memory_space<vmem>>, vector<8x784xbf16>
    %c0_1 = arith.constant 0 : index
    %c0_2 = arith.constant 0 : index
    %1 = vector.load %arg2[%c0_1, %c0_2] : memref<784x128xbf16, #tpu.memory_space<vmem>>, vector<784x128xbf16>
    %cst = arith.constant dense<0.000000e+00> : vector<8x128xf32>
    %2 = tpu.matmul %0, %1, %cst {dimension_numbers = #tpu.dot_dimension_numbers<[1], [0], [0], [1], [0, 0, 1, 1], [], []>} : vector<8x784xbf16>, vector<784x128xbf16>, vector<8x128xf32> -> vector<8x128xf32>
    %cst_3 = arith.constant 0.000000e+00 : f32
    %3 = vector.broadcast %cst_3 : f32 to vector<8x128xf32>
    %4 = arith.maximumf %2, %3 : vector<8x128xf32>
    %5 = arith.truncf %4 : vector<8x128xf32> to vector<8x128xbf16>
    %c0_4 = arith.constant 0 : index
    %c0_5 = arith.constant 0 : index
    %6 = vector.load %arg3[%c0_4, %c0_5] : memref<128x128xbf16, #tpu.memory_space<vmem>>, vector<128x128xbf16>
    %cst_6 = arith.constant dense<0.000000e+00> : vector<8x128xf32>
    %7 = tpu.matmul %5, %6, %cst_6 {dimension_numbers = #tpu.dot_dimension_numbers<[1], [0], [0], [1], [0, 0, 1, 1], [], []>} : vector<8x128xbf16>, vector<128x128xbf16>, vector<8x128xf32> -> vector<8x128xf32>
    %cst_7 = arith.constant 0.000000e+00 : f32
    %8 = vector.broadcast %cst_7 : f32 to vector<8x128xf32>
    %9 = arith.maximumf %7, %8 : vector<8x128xf32>
    %10 = arith.truncf %9 : vector<8x128xf32> to vector<8x128xbf16>
    %c0_8 = arith.constant 0 : index
    %c0_9 = arith.constant 0 : index
    %11 = vector.load %arg4[%c0_8, %c0_9] : memref<128x128xbf16, #tpu.memory_space<vmem>>, vector<128x128xbf16>
    %cst_10 = arith.constant dense<0.000000e+00> : vector<8x128xf32>
    %12 = tpu.matmul %10, %11, %cst_10 {dimension_numbers = #tpu.dot_dimension_numbers<[1], [0], [0], [1], [0, 0, 1, 1], [], []>} : vector<8x128xbf16>, vector<128x128xbf16>, vector<8x128xf32> -> vector<8x128xf32>
    %13 = arith.truncf %12 : vector<8x128xf32> to vector<8x128xbf16>
    %c0_11 = arith.constant 0 : index
    %c0_12 = arith.constant 0 : index
    %14 = vector.load %arg5[%c0_11, %c0_12] : memref<8x128xbf16, #tpu.memory_space<vmem>>, vector<8x128xbf16>
    tpu.vector_store %arg5[%c0_11, %c0_12], %13 {strides = array<i32>} : memref<8x128xbf16, #tpu.memory_space<vmem>>, vector<8x128xbf16>,
    return
  }
  func.func @transform_0(%arg0: i32) -> (i32, i32) {
    %c0_i32 = arith.constant 0 : i32
    %c0_i32_0 = arith.constant 0 : i32
    return %arg0, %c0_i32 : i32, i32
  }
  func.func @transform_1(%arg0: i32) -> (i32, i32) {
    %c0_i32 = arith.constant 0 : i32
    %c0_i32_0 = arith.constant 0 : i32
    %c0_i32_1 = arith.constant 0 : i32
    return %c0_i32, %c0_i32_0 : i32, i32
  }
  func.func @transform_2(%arg0: i32) -> (i32, i32) {
    %c0_i32 = arith.constant 0 : i32
    %c0_i32_0 = arith.constant 0 : i32
    %c0_i32_1 = arith.constant 0 : i32
    return %c0_i32, %c0_i32_0 : i32, i32
  }
  func.func @transform_3(%arg0: i32) -> (i32, i32) {
    %c0_i32 = arith.constant 0 : i32
    %c0_i32_0 = arith.constant 0 : i32
    %c0_i32_1 = arith.constant 0 : i32
    return %c0_i32, %c0_i32_0 : i32, i32
  }
  func.func @transform_4(%arg0: i32) -> (i32, i32) {
    %c0_i32 = arith.constant 0 : i32
    %c0_i32_0 = arith.constant 0 : i32
    return %arg0, %c0_i32 : i32, i32
  }
}

</mosaic_0001>

<bundles_post_ra>
// kernel: tpu_custom_call.1
= control target key start
LH: loop header
LB: loop body
LE: loop exit
PB: predicated region body
PF: predicated region fallthrough
CT: control target
= control target key end

     0   :  { %9 = vsyncpa [#allocation3], 0  ;;  %s1417_s0 = inlined_call_operand.hbm [shape: bf16[8,784], index: 0, kind: input, shape index: {}]   ;;  %s1418_s1 = inlined_call_operand.hbm [shape: bf16[784,128], index: 1, kind: input, shape index: {}]   ;;  %s1419_s2 = inlined_call_operand.hbm [shape: bf16[128,128], index: 2, kind: input, shape index: {}]   ;;  %s1420_s3 = inlined_call_operand.hbm [shape: bf16[128,128], index: 3, kind: input, shape index: {}]   ;;  %s1421_s4 = inlined_call_operand.hbm [shape: bf16[8,128], index: 4, kind: output, shape index: {}]  }
   0x1   :  { %10 = vsyncpa [#allocation6], 0 }
   0x2   :  { %11 = vsyncpa [#allocation9], 0 }
   0x3   :  { %12 = vsyncpa [#allocation4], 0  ;;  %s1291_s15 = smov [#allocation5]   ;;  %s1173_s19 = scalar_lea.hbm %s1418_s1, 6272 }
   0x4   :  { %s28_s16 = sshll.u32 %s1291_s15, 4  ;;  %p1174_p0 = scmp.ne.s32.totalorder %s1418_s1, %s1173_s19  ;;  %s29_s16 = int_to_ptr.vmem [resolvable:$true] %s28_s16 }
   0x5   :  { %p1177_p1 = scmp.lt.u32.totalorder %s1173_s19, %s1418_s1 }
   0x7   :  { %p1179_p2 = pnand %p1177_p1, %p1174_p0 }
   0x9   :  { %1182 = shalt.err (!%p1179_p2)
}
   0xa   :  { %s1183_s24 = scalar_lea.vmem %s29_s16, 6272  ;;  %p1188_p4 = scmp.lt.s32.totalorder %s29_s16, %s29_s16 }
   0xb   :  { %p1184_p3 = scmp.ne.s32.totalorder %s29_s16, %s1183_s24  ;;  %p1189_p5 = scmp.lt.s32.totalorder %s1183_s24, %s1183_s24 }
   0xd   :  { %p1190_p6 = por %p1189_p5, %p1188_p4 }
   0xf   :  { %p1191_p7 = pnand %p1190_p6, %p1184_p3 }
  0x11   :  { %1194 = shalt.err (!%p1191_p7)
}
  0x12   :  { %s1292_s25 = smov 64   ;;  %s1293_s26 = smov 4  }
  0x13   :  { %34 = dma.hbm_to_vmem [thread:$0]  %s1418_s1, 6272, %s29_s16, [#allocation6], %s1292_s25, %s1292_s25, %s1293_s26  }
  0x14   :  { %s1294_s29 = smov [#allocation2]   ;;  %s1295_s5 = smov [#allocation7]  }
  0x15   :  { %s19_s30 = sshll.u32 %s1294_s29, 4  ;;  %s40_s6 = sshll.u32 %s1295_s5, 4  ;;  %s20_s30 = int_to_ptr.vmem [resolvable:$true] %s19_s30  ;;  %s41_s6 = int_to_ptr.vmem [resolvable:$true] %s40_s6 }
  0x16   :  { %s1195_s9 = scalar_lea.hbm %s1417_s0, 448 }
  0x17   :  { %p1196_p8 = scmp.ne.s32.totalorder %s1417_s0, %s1195_s9  ;;  %p1199_p9 = scmp.lt.u32.totalorder %s1195_s9, %s1417_s0 }
  0x19   :  { %p1201_p10 = pnand %p1199_p9, %p1196_p8 }
  0x1b   :  { %1204 = shalt.err (!%p1201_p10)
}
  0x1c   :  { %s1205_s1 = scalar_lea.vmem %s20_s30, 448  ;;  %p1210_p12 = scmp.lt.s32.totalorder %s20_s30, %s20_s30 }
  0x1d   :  { %p1206_p11 = scmp.ne.s32.totalorder %s20_s30, %s1205_s1  ;;  %p1211_p13 = scmp.lt.s32.totalorder %s1205_s1, %s1205_s1 }
  0x1f   :  { %p1212_p0 = por %p1211_p13, %p1210_p12 }
  0x21   :  { %p1213_p1 = pnand %p1212_p0, %p1206_p11 }
  0x23   :  { %1216 = shalt.err (!%p1213_p1)
}
  0x24   :  { %22 = dma.hbm_to_vmem [thread:$0]  %s1417_s0, 448, %s20_s30, [#allocation3]  }
  0x25   :  { %s1217_s18 = scalar_lea.hbm %s1419_s2, 1024 }
  0x26   :  { %p1218_p2 = scmp.ne.s32.totalorder %s1419_s2, %s1217_s18  ;;  %p1221_p3 = scmp.lt.u32.totalorder %s1217_s18, %s1419_s2 }
  0x28   :  { %p1223_p4 = pnand %p1221_p3, %p1218_p2 }
  0x2a   :  { %1226 = shalt.err (!%p1223_p4)
}
  0x2b   :  { %s1227_s23 = scalar_lea.vmem %s41_s6, 1024  ;;  %p1232_p6 = scmp.lt.s32.totalorder %s41_s6, %s41_s6 }
  0x2c   :  { %p1228_p5 = scmp.ne.s32.totalorder %s41_s6, %s1227_s23  ;;  %p1233_p7 = scmp.lt.s32.totalorder %s1227_s23, %s1227_s23 }
  0x2e   :  { %p1234_p8 = por %p1233_p7, %p1232_p6 }
  0x30   :  { %p1235_p9 = pnand %p1234_p8, %p1228_p5 }
  0x32   :  { %1238 = shalt.err (!%p1235_p9)
}
  0x33   :  { %46 = dma.hbm_to_vmem [thread:$0]  %s1419_s2, 1024, %s41_s6, [#allocation6], %s1292_s25, %s1292_s25, %s1293_s26  }
  0x34   :  { %s1296_s27 = smov [#allocation8]   ;;  %s1239_s5 = scalar_lea.hbm %s1420_s3, 1024 }
  0x35   :  { %s52_s28 = sshll.u32 %s1296_s27, 4  ;;  %p1240_p10 = scmp.ne.s32.totalorder %s1420_s3, %s1239_s5  ;;  %s53_s28 = int_to_ptr.vmem [resolvable:$true] %s52_s28 }
  0x36   :  { %p1243_p11 = scmp.lt.u32.totalorder %s1239_s5, %s1420_s3 }
  0x38   :  { %p1245_p12 = pnand %p1243_p11, %p1240_p10 }
  0x3a   :  { %1248 = shalt.err (!%p1245_p12)
}
  0x3b   :  { %s1249_s11 = scalar_lea.vmem %s53_s28, 1024  ;;  %p1254_p0 = scmp.lt.s32.totalorder %s53_s28, %s53_s28 }
  0x3c   :  { %p1250_p13 = scmp.ne.s32.totalorder %s53_s28, %s1249_s11  ;;  %p1255_p1 = scmp.lt.s32.totalorder %s1249_s11, %s1249_s11 }
  0x3e   :  { %p1256_p2 = por %p1255_p1, %p1254_p0 }
  0x40   :  { %p1257_p3 = pnand %p1256_p2, %p1250_p13 }
  0x42   :  { %1260 = shalt.err (!%p1257_p3)
}
  0x43   :  { %58 = dma.hbm_to_vmem [thread:$0]  %s1420_s3, 1024, %s53_s28, [#allocation9], %s1292_s25, %s1292_s25, %s1293_s26  }
  0x44   :  { %1283 = dma.done.wait [#allocation3], 448  }
  0x45   :  { %1284 = vsyncadd [#allocation3], 4294966848 }
  0x46   :  { %1285 = dma.done.wait [#allocation6], 7296  }
  0x47   :  { %1286 = vsyncadd [#allocation6], 4294960000 }
  0x48   :  { %1287 = dma.done.wait [#allocation9], 1024  }
  0x49   :  { %1288 = vsyncadd [#allocation9], 4294966272  ;;  %v1101_v0 = vld [vmem:[#allocation5 + $0x40] sm:$0xff]   ;;  %v1105_v4 = vld [vmem:[#allocation5 + $0x48] sm:$0xff]   ;;  %v1297_v40 = vmov 0.0   ;;  %vm1298_vm0 = vmmov 0  }
  0x4a   :  { %v1102_v1 = vld [vmem:[#allocation5 + $0xc0] sm:$0xff]   ;;  %960 = vmatprep.subr.bf16.mxu0 %v1101_v0  ;;  %v1106_v5 = vld [vmem:[#allocation5 + $0xc8] sm:$0xff]   ;;  %v1109_v8 = vld [vmem:[#allocation5 + $0x50] sm:$0xff]   ;;  %vm492_vm1 = vcmask 130048   ;;  %s1299_s3 = smov [#allocation10]  }
  0x4b   :  { %v1103_v2 = vld [vmem:[#allocation5] sm:$0xff]   ;;  %982 = vmatprep.subr.bf16.mxu1 %v1102_v1  ;;  %v1107_v6 = vld [vmem:[#allocation5 + $0x8] sm:$0xff]   ;;  %v1110_v9 = vld [vmem:[#allocation5 + $0xd0] sm:$0xff]   ;;  %s876_s25 = sshll.u32 %s1299_s3, 4  ;;  %s877_s25 = int_to_ptr.vmem [resolvable:$true] %s876_s25 }
  0x4c   :  { %v1104_v3 = vld [vmem:[#allocation5 + $0x80] sm:$0xff]   ;;  %961 = vmatpush3.bf16.msra.mxu0 %v1103_v2  ;;  %v1108_v7 = vld [vmem:[#allocation5 + $0x88] sm:$0xff]   ;;  %v1111_v10 = vld [vmem:[#allocation5 + $0x10] sm:$0xff]   ;;  %s1261_s26 = scalar_lea.vmem %s877_s25, 64  ;;  %p1266_p5 = scmp.lt.s32.totalorder %s877_s25, %s877_s25 }
  0x4d   :  { %983 = vmatpush3.bf16.msra.mxu1 %v1104_v3  ;;  %962 = vmatprep.subr.bf16.mxu0 %v1105_v4  ;;  %v1112_v11 = vld [vmem:[#allocation5 + $0x90] sm:$0xff]   ;;  %v1113_v12 = vld [vmem:[#allocation5 + $0x58] sm:$0xff]   ;;  %v1117_v16 = vld [vmem:[#allocation5 + $0x60] sm:$0xff]   ;;  %p1262_p4 = scmp.ne.s32.totalorder %s877_s25, %s1261_s26  ;;  %p1267_p6 = scmp.lt.s32.totalorder %s1261_s26, %s1261_s26 }
  0x4e   :  { %984 = vmatprep.subr.bf16.mxu1 %v1106_v5  ;;  %v1114_v13 = vld [vmem:[#allocation5 + $0xd8] sm:$0xff]   ;;  %v1118_v17 = vld [vmem:[#allocation5 + $0xe0] sm:$0xff]   ;;  %v1121_v20 = vld [vmem:[#allocation5 + $0x68] sm:$0xff]  }
  0x4f   :  { %v1115_v14 = vld [vmem:[#allocation5 + $0x18] sm:$0xff]   ;;  %v1119_v18 = vld [vmem:[#allocation5 + $0x20] sm:$0xff]   ;;  %v1122_v21 = vld [vmem:[#allocation5 + $0xe8] sm:$0xff]   ;;  %p1268_p7 = por %p1267_p6, %p1266_p5 }
  0x50   :  { %963 = vmatpush3.bf16.msra.mxu0 %v1107_v6  ;;  %v1116_v15 = vld [vmem:[#allocation5 + $0x98] sm:$0xff]   ;;  %v1120_v19 = vld [vmem:[#allocation5 + $0xa0] sm:$0xff]   ;;  %v1123_v22 = vld [vmem:[#allocation5 + $0x28] sm:$0xff]  }
  0x51   :  { %985 = vmatpush3.bf16.msra.mxu1 %v1108_v7  ;;  %964 = vmatprep.subr.bf16.mxu0 %v1109_v8  ;;  %v1124_v23 = vld [vmem:[#allocation5 + $0xa8] sm:$0xff]   ;;  %v1125_v24 = vld [vmem:[#allocation5 + $0x70] sm:$0xff]   ;;  %v1129_v28 = vld [vmem:[#allocation5 + $0x78] sm:$0xff]   ;;  %p1269_p8 = pnand %p1268_p7, %p1262_p4 }
  0x52   :  { %986 = vmatprep.subr.bf16.mxu1 %v1110_v9  ;;  %v1126_v25 = vld [vmem:[#allocation5 + $0xf0] sm:$0xff]   ;;  %v1130_v29 = vld [vmem:[#allocation5 + $0xf8] sm:$0xff]   ;;  %v72_v32 = vld [vmem:[#allocation2] sm:$0xff] }
  0x53   :  { %v1127_v26 = vld [vmem:[#allocation5 + $0x30] sm:$0xff]   ;;  %v1131_v30 = vld [vmem:[#allocation5 + $0x38] sm:$0xff]   ;;  %v887_v34 = vcombine.low %v72_v32, %v72_v32  ;;  %v888_v35 = vcombine.high %v72_v32, %v72_v32  ;;  %v1137_v38 = vld [vmem:[#allocation5 + $0x140] sm:$0xff]  }
  0x54   :  { %965 = vmatpush3.bf16.msra.mxu0 %v1111_v10  ;;  %v1128_v27 = vld [vmem:[#allocation5 + $0xb0] sm:$0xff]   ;;  %v1132_v31 = vld [vmem:[#allocation5 + $0xb8] sm:$0xff]   ;;  %v1138_v39 = vld [vmem:[#allocation5 + $0x100] sm:$0xff]  }
  0x55   :  { %987 = vmatpush3.bf16.msra.mxu1 %v1112_v11  ;;  %966 = vmatprep.subr.bf16.mxu0 %v1113_v12  ;;  %v73_v33 = vld [vmem:[#allocation2 + $0x8] sm:$0xff]  ;;  %v1143_v45 = vld [vmem:[#allocation5 + $0x158] sm:$0xff]   ;;  %v1145_v47 = vld [vmem:[#allocation5 + $0x160] sm:$0xff]  }
  0x56   :  { %988 = vmatprep.subr.bf16.mxu1 %v1114_v13  ;;  %v889_v36 = vcombine.low %v73_v33, %v73_v33  ;;  %v890_v37 = vcombine.high %v73_v33, %v73_v33  ;;  %528 = vmatprep.mubr.bf16.mxu0 %v888_v35  ;;  %v1139_v41 = vld [vmem:[#allocation5 + $0x148] sm:$0xff]   ;;  %v1141_v43 = vld [vmem:[#allocation5 + $0x150] sm:$0xff]   ;;  %v1144_v46 = vld [vmem:[#allocation5 + $0x118] sm:$0xff]  }
  0x57   :  { %v1140_v42 = vld [vmem:[#allocation5 + $0x108] sm:$0xff]   ;;  %v1142_v44 = vld [vmem:[#allocation5 + $0x110] sm:$0xff]   ;;  %v1146_v48 = vld [vmem:[#allocation5 + $0x120] sm:$0xff]  }
  0x58   :  { %967 = vmatpush3.bf16.msra.mxu0 %v1115_v14  ;;  %568 = vmatprep.mubr.bf16.mxu1 %v890_v37  ;;  %v1147_v49 = vld [vmem:[#allocation5 + $0x168] sm:$0xff]   ;;  %v1153_v50 = vld [vmem:[#allocation5 + $0x180] sm:$0xff]   ;;  %v74_v51 = vld [vmem:[#allocation2 + $0x10] sm:$0xff] }
  0x59   :  { %989 = vmatpush3.bf16.msra.mxu1 %v1116_v15  ;;  %968 = vmatprep.subr.bf16.mxu0 %v1117_v16  ;;  %v892_v52 = vcombine.high %v74_v51, %v74_v51  ;;  %v1156_v53 = vld [vmem:[#allocation2 + $0x18] ss:$0 sps:$4 sm:$0xff]   ;;  %v1148_v54 = vld [vmem:[#allocation5 + $0x128] sm:$0xff]   ;;  %v1149_v55 = vld [vmem:[#allocation5 + $0x170] sm:$0xff]   ;;  %v891_v59 = vcombine.low %v74_v51, %v74_v51 }
  0x5a   :  { %990 = vmatprep.subr.bf16.mxu1 %v1118_v17  ;;  %v1150_v56 = vld [vmem:[#allocation5 + $0x130] sm:$0xff]   ;;  %v1151_v57 = vld [vmem:[#allocation5 + $0x178] sm:$0xff]   ;;  %v1157_v60 = vld [vmem:[#allocation7] sm:$0xff]  }
  0x5b   :  { %v1152_v58 = vld [vmem:[#allocation5 + $0x138] sm:$0xff]   ;;  %v1158_v61 = vld [vmem:[#allocation7 + $0x8] sm:$0xff]   ;;  %v1160_v63 = vld [vmem:[#allocation7 + $0x18] sm:$0xff]  }
  0x5c   :  { %969 = vmatpush3.bf16.msra.mxu0 %v1119_v18  ;;  %v1159_v62 = vld [vmem:[#allocation7 + $0x10] sm:$0xff]   ;;  %v1161_v0 = vld [vmem:[#allocation7 + $0x20] sm:$0xff]   ;;  %v1162_v1 = vld [vmem:[#allocation7 + $0x28] sm:$0xff]  }
  0x5d   :  { %991 = vmatpush3.bf16.msra.mxu1 %v1120_v19  ;;  %970 = vmatprep.subr.bf16.mxu0 %v1121_v20  ;;  %v1163_v2 = vld [vmem:[#allocation7 + $0x30] sm:$0xff]   ;;  %v1164_v3 = vld [vmem:[#allocation7 + $0x38] sm:$0xff]   ;;  %v1165_v4 = vld [vmem:[#allocation8] sm:$0xff]  }
  0x5e   :  { %992 = vmatprep.subr.bf16.mxu1 %v1122_v21  ;;  %v1166_v5 = vld [vmem:[#allocation8 + $0x8] sm:$0xff]   ;;  %v1167_v6 = vld [vmem:[#allocation8 + $0x10] sm:$0xff]   ;;  %v1168_v7 = vld [vmem:[#allocation8 + $0x18] sm:$0xff]  }
  0x5f   :  { %v1169_v8 = vld [vmem:[#allocation8 + $0x20] sm:$0xff]   ;;  %v1170_v9 = vld [vmem:[#allocation8 + $0x28] sm:$0xff]   ;;  %v1171_v10 = vld [vmem:[#allocation8 + $0x30] sm:$0xff]  }
  0x60   :  { %971 = vmatpush3.bf16.msra.mxu0 %v1123_v22  ;;  %v1172_v35 = vld [vmem:[#allocation8 + $0x38] sm:$0xff]  }
  0x61   :  { %993 = vmatpush3.bf16.msra.mxu1 %v1124_v23  ;;  %972 = vmatprep.subr.bf16.mxu0 %v1125_v24 }
  0x62   :  { %994 = vmatprep.subr.bf16.mxu1 %v1126_v25 }
  0x64   :  { %973 = vmatpush3.bf16.msra.mxu0 %v1127_v26 }
  0x65   :  { %995 = vmatpush3.bf16.msra.mxu1 %v1128_v27  ;;  %974 = vmatprep.subr.bf16.mxu0 %v1129_v28 }
  0x66   :  { %996 = vmatprep.subr.bf16.mxu1 %v1130_v29 }
  0x68   :  { %975 = vmatpush3.bf16.msra.mxu0 %v1131_v30 }
  0x69   :  { %997 = vmatpush3.bf16.msra.mxu1 %v1132_v31  ;;  %1004 = vmatprep.subr.bf16.mxu0 %v1137_v38 }
  0x6a   :  { %1046 = vmatprep.subr.bf16.mxu1 %v1297_v40 }
  0x6b   :  { %529 = vmatmul.mubr.bf16.vlgmr.msra.gmra.mrb[0].mxu0 %v887_v34 }
  0x6c   :  { %569 = vmatmul.mubr.bf16.vlgmr.msra.gmra.mrb[0].mxu1 %v889_v36  ;;  %1005 = vmatpush3.bf16.msra.mxu0 %v1138_v39 }
  0x6d   :  { %1048 = vmatprep.mubr.msk.bf16.mxu1 %vm1298_vm0, %v1297_v40  ;;  %1006 = vmatprep.subr.bf16.mxu0 %v1139_v41 }
  0x6e   :  { %1047 = vmatpush3.bf16.msra.mxu1 %v1153_v50  ;;  %608 = vmatprep.mubr.bf16.mxu0 %v892_v52 }
  0x6f   :  { %1052 = vmatprep.subr.bf16.mxu1 %v1297_v40 }
  0x70   :  { %1007 = vmatpush3.bf16.msra.mxu0 %v1140_v42 }
  0x71   :  { %1008 = vmatprep.subr.bf16.mxu0 %v1141_v43 }
  0x74   :  { %1009 = vmatpush3.bf16.msra.mxu0 %v1142_v44  ;;  %1049 = vmatmul.mubr.msk.bf16.vlgmr.msra.gmra.mrb[4].mxu1 %vm492_vm1, %v1156_v53 }
  0x75   :  { %1010 = vmatprep.subr.bf16.mxu0 %v1143_v45  ;;  %1068 = vmatprep.mubr.msk.bf16.mxu1 %vm1298_vm0, %v1297_v40 }
  0x76   :  { %1053 = vmatpush3.bf16.msra.mxu1 %v1157_v60 }
  0x77   :  { %1054 = vmatprep.subr.bf16.mxu1 %v1297_v40 }
  0x78   :  { %1011 = vmatpush3.bf16.msra.mxu0 %v1144_v46 }
  0x79   :  { %1012 = vmatprep.subr.bf16.mxu0 %v1145_v47 }
  0x7a   :  { %1055 = vmatpush3.bf16.msra.mxu1 %v1158_v61 }
  0x7b   :  { %1056 = vmatprep.subr.bf16.mxu1 %v1297_v40 }
  0x7c   :  { %1013 = vmatpush3.bf16.msra.mxu0 %v1146_v48 }
  0x7d   :  { %1014 = vmatprep.subr.bf16.mxu0 %v1147_v49 }
  0x7e   :  { %1057 = vmatpush3.bf16.msra.mxu1 %v1159_v62 }
  0x7f   :  { %1058 = vmatprep.subr.bf16.mxu1 %v1297_v40 }
  0x80   :  { %1015 = vmatpush3.bf16.msra.mxu0 %v1148_v54 }
  0x81   :  { %1016 = vmatprep.subr.bf16.mxu0 %v1149_v55 }
  0x82   :  { %1059 = vmatpush3.bf16.msra.mxu1 %v1160_v63 }
  0x83   :  { %1060 = vmatprep.subr.bf16.mxu1 %v1297_v40 }
  0x84   :  { %1017 = vmatpush3.bf16.msra.mxu0 %v1150_v56 }
  0x85   :  { %1018 = vmatprep.subr.bf16.mxu0 %v1151_v57 }
  0x86   :  { %1061 = vmatpush3.bf16.msra.mxu1 %v1161_v0 }
  0x87   :  { %1062 = vmatprep.subr.bf16.mxu1 %v1297_v40 }
  0x88   :  { %1019 = vmatpush3.bf16.msra.mxu0 %v1152_v58 }
  0x89   :  { %1072 = vmatprep.subr.bf16.mxu0 %v1297_v40 }
  0x8a   :  { %1063 = vmatpush3.bf16.msra.mxu1 %v1162_v1 }
  0x8b   :  { %609 = vmatmul.mubr.bf16.vlgmr.msra.gmra.mrb[4].mxu0 %v891_v59  ;;  %1064 = vmatprep.subr.bf16.mxu1 %v1297_v40 }
  0x8c   :  { %1088 = vmatprep.mubr.msk.bf16.mxu0 %vm1298_vm0, %v1297_v40  ;;  %1073 = vmatpush3.bf16.msra.mxu0 %v1165_v4 }
  0x8d   :  { %1074 = vmatprep.subr.bf16.mxu0 %v1297_v40 }
  0x8e   :  { %1065 = vmatpush3.bf16.msra.mxu1 %v1163_v2 }
  0x8f   :  { %1066 = vmatprep.subr.bf16.mxu1 %v1297_v40 }
  0x90   :  { %1075 = vmatpush3.bf16.msra.mxu0 %v1166_v5 }
  0x91   :  { %1076 = vmatprep.subr.bf16.mxu0 %v1297_v40 }
  0x92   :  { %1067 = vmatpush3.bf16.msra.mxu1 %v1164_v3 }
  0x94   :  { %1077 = vmatpush3.bf16.msra.mxu0 %v1167_v6 }
  0x95   :  { %1078 = vmatprep.subr.bf16.mxu0 %v1297_v40 }
  0x98   :  { %1079 = vmatpush3.bf16.msra.mxu0 %v1168_v7 }
  0x99   :  { %1080 = vmatprep.subr.bf16.mxu0 %v1297_v40 }
  0x9c   :  { %1081 = vmatpush3.bf16.msra.mxu0 %v1169_v8 }
  0x9d   :  { %1082 = vmatprep.subr.bf16.mxu0 %v1297_v40 }
  0xa0   :  { %1083 = vmatpush3.bf16.msra.mxu0 %v1170_v9 }
  0xa1   :  { %1084 = vmatprep.subr.bf16.mxu0 %v1297_v40 }
  0xa4   :  { %1085 = vmatpush3.bf16.msra.mxu0 %v1171_v10 }
  0xa5   :  { %1086 = vmatprep.subr.bf16.mxu0 %v1297_v40 }
  0xa8   :  { %1087 = vmatpush3.bf16.msra.mxu0 %v1172_v35 }
 0x13e   :  { %v976_v11 = vpop.f32.mrb[0].mxu0 }
 0x13f   :  { %v998_v12 = vpop.f32.mrb[0].mxu1  ;;  %v977_v13 = vpop.f32.mrb[1].mxu0 }
 0x140   :  { %v999_v14 = vpop.f32.mrb[1].mxu1  ;;  %v978_v15 = vadd.f32 %v977_v13, %v976_v11  ;;  %v979_v17 = vpop.f32.mrb[2].mxu0 }
 0x141   :  { %v1000_v16 = vadd.f32 %v999_v14, %v998_v12  ;;  %v1001_v18 = vpop.f32.mrb[2].mxu1  ;;  %v980_v19 = vpop.f32.mrb[3].mxu0 }
 0x142   :  { %v1002_v20 = vpop.f32.mrb[3].mxu1 }
 0x143   :  { %v571_v21 = vadd.f32 %v1000_v16, %v978_v15 }
 0x147   :  { %v650_v22 = vpop.f32.mrb[4].mxu1 }
 0x148   :  { %v1050_v23 = vpop.f32.mrb[5].mxu1 }
 0x149   :  { %v653_v24 = vpop.f32.mrb[6].mxu1 }
 0x14a   :  { %v1051_v25 = vpop.f32.mrb[7].mxu1 }
 0x15e   :  { %v1020_v26 = vpop.f32.mrb[4].mxu0 }
 0x15f   :  { %v1021_v27 = vpop.f32.mrb[5].mxu0 }
 0x160   :  { %v1022_v28 = vadd.f32 %v1021_v27, %v1020_v26  ;;  %v1023_v29 = vpop.f32.mrb[6].mxu0 }
 0x161   :  { %v1024_v30 = vpop.f32.mrb[7].mxu0 }
 0x162   :  { %v611_v31 = vadd.f32 %v1022_v28, %v571_v21 }
 0x164   :  { %v651_v32 = vadd.f32 %v650_v22, %v611_v31 }
 0x166   :  { %v656_v33 = vmax.f32 %v651_v32, 0.0 }
 0x168   :  { %v657_v34 = vpack.c.bf16 %v656_v33, %v656_v33 }
 0x16a   :  { %1069 = vmatmul.mubr.bf16.vlgmr.msra.gmra.mrb[8].mxu1 %v657_v34 }
 0x23d   :  { %v756_v36 = vpop.f32.mrb[8].mxu1 }
 0x23e   :  { %v762_v37 = vmax.f32 %v756_v36, 0.0  ;;  %v1070_v38 = vpop.f32.mrb[9].mxu1 }
 0x23f   :  { %v759_v39 = vpop.f32.mrb[10].mxu1 }
 0x240   :  { %v763_v40 = vpack.c.bf16 %v762_v37, %v762_v37  ;;  %v1071_v41 = vpop.f32.mrb[11].mxu1 }
 0x242   :  { %1089 = vmatmul.mubr.bf16.vlgmr.msra.gmra.mrb[8].mxu0 %v763_v40 }
 0x315   :  { %v862_v42 = vpop.f32.mrb[8].mxu0 }
 0x316   :  { %v868_v43 = vpack.c.bf16 %v862_v42, %v862_v42  ;;  %v1090_v44 = vpop.f32.mrb[9].mxu0 }
 0x317   :  { %v865_v45 = vpop.f32.mrb[10].mxu0 }
 0x318   :  { %869 = vst [vmem:[#allocation10] sm:$0xf] %v868_v43  ;;  %v1091_v46 = vpop.f32.mrb[11].mxu0 }
 0x319   :  { %1272 = shalt.err (!%p1269_p8)
}
 0x31a   :  { %s1273_s1 = scalar_lea.hbm %s1421_s4, 64 }
 0x31b   :  { %p1274_p9 = scmp.ne.s32.totalorder %s1421_s4, %s1273_s1  ;;  %p1277_p10 = scmp.lt.u32.totalorder %s1273_s1, %s1421_s4 }
 0x31d   :  { %p1279_p11 = pnand %p1277_p10, %p1274_p9 }
 0x31f   :  { %1282 = shalt.err (!%p1279_p11)
}
 0x320   :  { %879 = dma.vmem_to_hbm [thread:$0]  %s877_s25, 64, %s1421_s4, [#allocation4]  }
 0x321   :  { %1289 = dma.done.wait [#allocation4], 64  }
 0x322   :  { %1290 = vsyncadd [#allocation4], 4294967232 }
 0x323   :  { %883 = vsyncpa [#allocation3], 1 }
 0x324   :  { %884 = vsyncpa [#allocation6], 1 }
 0x325   :  { %885 = vsyncpa [#allocation9], 1 }
 0x326   :  { %886 = vsyncpa [#allocation4], 1 }

</bundles_post_ra>
